<compile_context>
chip_gen: v5e
topology: v5e:2x2
jax: 0.10.0
libtpu: 0.0.40
codegen_flags: <defaults>
</compile_context>

<pallas_src>
import jax
import jax.numpy as jnp
from jax.experimental import pallas as pl
from jax.experimental.pallas import tpu as pltpu


def _copy_kernel(x_ref, o_ref):
    # Chomp is expressed entirely by the grid/BlockSpecs: lane-dense VMEM copy.
    o_ref[...] = x_ref[...]


def _block_sizes(rows, l_out, itemsize, target_bytes):
    """Pick (row_block, time_block) ~target_bytes, layout-friendly."""
    sub = max(8, 32 // itemsize)          # packed-sublane multiple per dtype
    max_t = (l_out // 128) * 128          # largest lane-aligned time width (>=128 here)

    if sub * max_t * itemsize <= target_bytes:
        t_blk = max_t                     # whole lane-aligned extent fits
    else:
        t_blk = (target_bytes // (sub * itemsize) // 128) * 128
        t_blk = min(max(128, t_blk), max_t)

    r_target = max(1, target_bytes // (t_blk * itemsize))
    if r_target >= rows:
        r_blk = rows                      # full extent -> always legal
    else:
        r_blk = min(rows, max(sub, (r_target // sub) * sub))
    return r_blk, t_blk


def chomp1d(x: jax.Array, chomp_size: int, *,
            target_block_bytes: int = 2 << 20,
            min_pallas_bytes: int = 1 << 20) -> jax.Array:
    """Equivalent of Chomp1d(chomp_size).forward(x) for x of shape (N, C, L)."""
    N, C, L = x.shape
    assert 0 < chomp_size < L, "chomp_size must be in (0, L)"
    L_out = L - chomp_size
    itemsize = jnp.dtype(x.dtype).itemsize
    total_bytes = N * C * L * itemsize

    # Fast path: tiny tensors or L_out < 128 (sub-lane-width rows) -> let XLA
    # emit/fuse the slice; a standalone kernel would be strictly slower.
    if L_out < 128 or total_bytes < min_pallas_bytes:
        return x[:, :, :L_out]

    rows = N * C
    x2 = x.reshape(rows, L)               # free, contiguous

    r_blk, t_blk = _block_sizes(rows, L_out, itemsize, target_block_bytes)
    grid = (pl.cdiv(rows, r_blk), pl.cdiv(L_out, t_blk))  # largest axis first

    out2 = pl.pallas_call(
        _copy_kernel,
        out_shape=jax.ShapeDtypeStruct((rows, L_out), x.dtype),
        grid=grid,
        in_specs=[
            # Same block indices as the output: blocks past L_out on the input
            # (only possible in the final, partial time block) are read but the
            # corresponding output positions are masked, so the tail never
            # lands in the result.
            pl.BlockSpec((r_blk, t_blk), lambda r, t: (r, t)),
        ],
        out_specs=pl.BlockSpec((r_blk, t_blk), lambda r, t: (r, t)),
        compiler_params=pltpu.CompilerParams(
            dimension_semantics=("parallel", "parallel"),
        ),
        cost_estimate=pl.CostEstimate(
            flops=0,
            transcendentals=0,
            bytes_accessed=2 * rows * L_out * itemsize,
        ),
    )(x2)

    return out2.reshape(N, C, L_out)


if __name__ == "__main__":
    key = jax.random.PRNGKey(0)

    # Case 1: small TCN-like shape (N=2, C=4, L=16) -> XLA-slice fast path.
    x1 = jax.random.normal(key, (2, 4, 16), dtype=jnp.float32)
    out1 = jax.block_until_ready(chomp1d(x1, 2))
    ref1 = x1[:, :, :-2]
    assert out1.shape == (2, 4, 14) and out1.dtype == x1.dtype
    assert jnp.array_equal(out1, ref1), "mismatch (fast path)"

    # Case 2: lane-aligned L_out (256), Pallas path forced (min_pallas_bytes=0).
    x2 = jax.random.normal(jax.random.PRNGKey(1), (2, 8, 384), dtype=jnp.float32)
    out2 = jax.block_until_ready(chomp1d(x2, 128, min_pallas_bytes=0))
    ref2 = x2[:, :, :-128]
    assert out2.shape == (2, 8, 256)
    assert jnp.array_equal(out2, ref2), "mismatch (aligned Pallas path)"

    # Case 3: ragged L_out (194) -> time-tiled Pallas path with masked tail block.
    x3 = jax.random.normal(jax.random.PRNGKey(2), (2, 8, 200), dtype=jnp.float32)
    out3 = jax.block_until_ready(chomp1d(x3, 6, min_pallas_bytes=0))
    ref3 = x3[:, :, :-6]
    assert out3.shape == (2, 8, 194)
    assert jnp.array_equal(out3, ref3), "mismatch (ragged Pallas path)"

    # Case 4: bf16 input (packed-sublane rounding exercised), Pallas path.
    x4 = jax.random.normal(jax.random.PRNGKey(3), (4, 8, 384)).astype(jnp.bfloat16)
    out4 = jax.block_until_ready(chomp1d(x4, 128, min_pallas_bytes=0))
    ref4 = x4[:, :, :-128]
    assert out4.shape == (4, 8, 256) and out4.dtype == jnp.bfloat16
    assert jnp.array_equal(out4, ref4), "mismatch (bf16 Pallas path)"

    print("KERNEL_OK")
</pallas_src>

<mosaic_0001>
module attributes {stable_mosaic.version = 11 : i64} {
  func.func @_copy_kernel(%arg0: i32, %arg1: i32, %arg2: memref<16x256xf32, #tpu.memory_space<vmem>>, %arg3: memref<16x256xf32, #tpu.memory_space<vmem>>) attributes {dimension_semantics = [#tpu.dimension_semantics<parallel>, #tpu.dimension_semantics<parallel>], iteration_bounds = array<i64: 1, 1>, scalar_prefetch = 0 : i64, scratch_operands = 0 : i64, tpu.core_type = #tpu.core_type<tc>, window_params = [{transform_indices = @transform_0, window_bounds = array<i64: 16, 256>}, {transform_indices = @transform_1, window_bounds = array<i64: 16, 256>}]} {
    %c0 = arith.constant 0 : index
    %c0_0 = arith.constant 0 : index
    %0 = vector.load %arg2[%c0, %c0_0] : memref<16x256xf32, #tpu.memory_space<vmem>>, vector<16x256xf32>
    %c0_1 = arith.constant 0 : index
    %c0_2 = arith.constant 0 : index
    %1 = vector.load %arg3[%c0_1, %c0_2] : memref<16x256xf32, #tpu.memory_space<vmem>>, vector<16x256xf32>
    tpu.vector_store %arg3[%c0_1, %c0_2], %0 {strides = array<i32>} : memref<16x256xf32, #tpu.memory_space<vmem>>, vector<16x256xf32>,
    return
  }
  func.func @transform_0(%arg0: i32, %arg1: i32) -> (i32, i32) {
    %c0_i32 = arith.constant 0 : i32
    return %arg0, %arg1 : i32, i32
  }
  func.func @transform_1(%arg0: i32, %arg1: i32) -> (i32, i32) {
    %c0_i32 = arith.constant 0 : i32
    return %arg0, %arg1 : i32, i32
  }
}

</mosaic_0001>

<bundles_post_ra>
// kernel: tpu_custom_call.1
= control target key start
LH: loop header
LB: loop body
LE: loop exit
PB: predicated region body
PF: predicated region fallthrough
CT: control target
= control target key end

     0   :  { %6 = vsyncpa [#allocation3], 0  ;;  %s130_s0 = inlined_call_operand.hbm [shape: f32[16,384], index: 0, kind: input, shape index: {}]   ;;  %s131_s1 = inlined_call_operand.hbm [shape: f32[16,256], index: 1, kind: output, shape index: {}]  }
   0x1   :  { %7 = vsyncpa [#allocation4], 0  ;;  %s12_s8 = sshll.u32 %s130_s0, 4  ;;  %s109_s9 = smov [#allocation2]   ;;  %s13_s8 = int_to_ptr.hbm [resolvable:$true] %s12_s8 }
   0x2   :  { %s14_s10 = sshll.u32 %s109_s9, 4  ;;  %s110_s11 = smov 384   ;;  %s15_s10 = int_to_ptr.vmem [resolvable:$true] %s14_s10 }
   0x3   :  { %s111_s12 = smov 256   ;;  %s112_s13 = smov 16  }
   0x4   :  { %20 = dma.hbm_to_vmem [thread:$0]  %s13_s8, 512, %s15_s10, [#allocation3], %s110_s11, %s111_s12, %s112_s13  }
   0x5   :  { %105 = dma.done.wait [#allocation3], 512  }
   0x6   :  { %106 = vsyncadd [#allocation3], 4294966784  ;;  %s113_s14 = smov [#allocation5]   ;;  %s39_s18 = sshll.u32 %s131_s1, 4  ;;  %v25_v0 = vld [vmem:[#allocation2] sm:$0xff]  ;;  %v26_v1 = vld [vmem:[#allocation2 + $0x8] sm:$0xff]  ;;  %s40_s18 = int_to_ptr.hbm [resolvable:$true] %s39_s18 }
   0x7   :  { %s37_s15 = sshll.u32 %s113_s14, 4  ;;  %v27_v2 = vld [vmem:[#allocation2 + $0x10] sm:$0xff]  ;;  %29 = vst [vmem:[#allocation5] sm:$0xff] %v25_v0  ;;  %v28_v3 = vld [vmem:[#allocation2 + $0x18] sm:$0xff]  ;;  %s38_s15 = int_to_ptr.vmem [resolvable:$true] %s37_s15 }
   0x8   :  { %30 = vst [vmem:[#allocation5 + $0x8] sm:$0xff] %v26_v1 }
   0x9   :  { %31 = vst [vmem:[#allocation5 + $0x10] sm:$0xff] %v27_v2 }
   0xa   :  { %32 = vst [vmem:[#allocation5 + $0x18] sm:$0xff] %v28_v3 }
   0xb   :  { %45 = dma.vmem_to_hbm [thread:$0]  %s38_s15, 512, %s40_s18, [#allocation4], %s111_s12, %s111_s12, %s112_s13  }
   0xc   :  { %107 = dma.done.wait [#allocation4], 512  }
   0xd   :  { %108 = vsyncadd [#allocation4], 4294966784 }
   0xe   :  { %50 = vsyncpa [#allocation3], 1 }
   0xf   :  { %51 = vsyncpa [#allocation4], 1 }

</bundles_post_ra>
